<compile_context>
chip_gen: v7x
topology: tpu7x:2x2x1
jax: 0.10.0
libtpu: 0.0.40
codegen_flags: <defaults>
</compile_context>

<pallas_src>
import functools

import jax
import jax.numpy as jnp
from jax.experimental import pallas as pl
from jax.experimental.pallas import tpu as pltpu


def _round_up(x, m):
    return (x + m - 1) // m * m


def _tpu_generation():
    try:
        kind = jax.devices()[0].device_kind.lower()
    except Exception:
        return "unknown"
    if "v7" in kind:
        return "v7x"
    if "v6" in kind:
        return "v6e"
    if "v5" in kind and ("lite" in kind or "5e" in kind):
        return "v5e"
    return "unknown"


# Per-generation defaults: (block_m, block_d, vmem_limit_bytes).
#  * block_m sets flops-per-weight-byte; target above the bf16 compute/HBM
#    roofline (~240 flop/B v5e, ~650 v6e, ~310 v7x per TC).
#  * v7x has only 64 MiB physical VMEM per TC -> smaller bd, <=56 MiB limit;
#    v5e/v6e have 128 MiB -> raise the limit so the big row tile fits.
_GEN_DEFAULTS = {
    "v5e": (512, 512, 100 * 1024 * 1024),
    "v6e": (1024, 512, 104 * 1024 * 1024),
    "v7x": (512, 256, 56 * 1024 * 1024),
    "unknown": (512, 256, 56 * 1024 * 1024),
}


def glu_mlp_kernel(x_ref, wu_ref, bu_ref, wd_ref, bdn_ref, o_ref, acc_ref, *,
                   block_d):
    """One (row-tile, D-tile) grid step.

    x_ref  : [bm, Hp]       token tile (weight dtype)
    wu_ref : [Hp, 2*bd]     fused up weights for this D tile ([W_a_j | W_b_j])
    bu_ref : [1, 2*bd]      fused up bias for this D tile (f32)
    wd_ref : [bd, Hp]       down weight tile (transposed, [in, out])
    bdn_ref: [1, Hp]        down bias (f32)
    o_ref  : [bm, Hp]       output tile (written on last D step)
    acc_ref: [bm, Hp] f32   down-proj accumulator (persists across D steps)
    """
    j = pl.program_id(1)

    @pl.when(j == 0)
    def _():
        # Fold the down-proj bias into the accumulator init: removes a full
        # [bm, Hp] f32 VPU add from the epilogue of the last D step.
        acc_ref[...] = jnp.broadcast_to(bdn_ref[...], acc_ref.shape)

    x = x_ref[...]
    # Single wide up-projection matmul for this D tile, then split the halves.
    u = jnp.dot(x, wu_ref[...], preferred_element_type=jnp.float32) + bu_ref[...]
    a = u[:, :block_d]
    b = u[:, block_d:]
    # SiLU gate in f32; sigmoid keeps the transcendental on the EUP slot.
    # TODO(synk): dropout omitted (identity in eval mode).
    g = a * (b * jax.nn.sigmoid(b))

    acc_ref[...] += jnp.dot(g.astype(wd_ref.dtype), wd_ref[...],
                            preferred_element_type=jnp.float32)

    @pl.when(j == pl.num_programs(1) - 1)
    def _():
        o_ref[...] = acc_ref[...].astype(o_ref.dtype)


def prepare_glu_params(w_up, b_up, w_down, b_down, *, block_d=None,
                       param_dtype=None):
    """One-time parameter prep (transpose / split / pad / fuse / cast).

    nn.Linear layout: w_up [2D, H], b_up [2D], w_down [H, D], b_down [H].
    Pass param_dtype=jnp.bfloat16 for production streaming (halves weight HBM
    traffic, full MXU rate); biases always stay f32.
    Returns kernel-layout params plus the chosen D tile size (use it as the
    `block_d` argument of glu_mlp).
    """
    two_d, H = w_up.shape
    D = w_down.shape[-1]
    assert two_d == 2 * D

    if block_d is None:
        block_d = _GEN_DEFAULTS[_tpu_generation()][1]
    if param_dtype is None:
        param_dtype = w_up.dtype

    Hp = _round_up(H, 128)
    bd = min(block_d, _round_up(D, 128))
    Dp = _round_up(D, bd)
    n_d = Dp // bd

    # chunk(2, dim=-1) of the up projection == row-wise split of W_up / b_up.
    wa = jnp.pad(w_up[:D].T, ((0, Hp - H), (0, Dp - D)))          # [Hp, Dp]
    wb = jnp.pad(w_up[D:].T, ((0, Hp - H), (0, Dp - D)))          # [Hp, Dp]
    # Interleave per D-tile: columns [a_tile_j | b_tile_j] so one BlockSpec
    # column-block carries both halves -> single matmul per grid step.
    w_up_fused = jnp.concatenate(
        [wa.reshape(Hp, n_d, bd), wb.reshape(Hp, n_d, bd)], axis=-1
    ).reshape(Hp, 2 * Dp).astype(param_dtype)

    ba = jnp.pad(b_up[:D].astype(jnp.float32), (0, Dp - D)).reshape(n_d, bd)
    bb = jnp.pad(b_up[D:].astype(jnp.float32), (0, Dp - D)).reshape(n_d, bd)
    b_up_fused = jnp.concatenate([ba, bb], axis=-1).reshape(1, 2 * Dp)

    w_down_t = jnp.pad(w_down.T, ((0, Dp - D), (0, Hp - H))).astype(param_dtype)
    b_down_p = jnp.pad(b_down.astype(jnp.float32), (0, Hp - H)).reshape(1, Hp)

    return dict(w_up_fused=w_up_fused, b_up_fused=b_up_fused,
                w_down_t=w_down_t, b_down=b_down_p, block_d=bd)


@functools.partial(jax.jit, static_argnames=("block_d", "block_m",
                                              "weight_buffers",
                                              "vmem_limit_bytes"))
def glu_mlp(x, w_up_fused, b_up_fused, w_down_t, b_down, *, block_d,
            block_m=None, weight_buffers=2, vmem_limit_bytes=None):
    """x: [..., H]; remaining args come from prepare_glu_params().

    block_d MUST be params['block_d'] (the fused-weight interleave width).
    """
    orig_shape = x.shape
    H = orig_shape[-1]
    Hp = w_up_fused.shape[0]
    Dp = w_up_fused.shape[1] // 2
    bd = block_d
    assert Dp % bd == 0, "block_d must be the value from prepare_glu_params()"

    gen = _tpu_generation()
    gdef_bm, _, gdef_vmem = _GEN_DEFAULTS[gen]
    if block_m is None:
        block_m = gdef_bm
    if vmem_limit_bytes is None:
        vmem_limit_bytes = gdef_vmem

    x2 = x.reshape(-1, H)
    M = x2.shape[0]

    # Row tile: multiple of 16 (bf16 (16,128) sublane packing). Generation
    # defaults are already multiples of 128 to match MXU tiles.
    bm = min(block_m, _round_up(M, 16))
    if gen == "v7x" and M >= 256 and M <= bm:
        # 2 TensorCores per chip: make sure the "parallel" row axis has at
        # least two tiles instead of one full-batch tile (else one TC idles).
        bm = _round_up(-(-M // 2), 16)
    Mp = _round_up(M, bm)

    compute_dtype = w_up_fused.dtype
    pad_m, pad_h = Mp - M, Hp - H
    if pad_m or pad_h:
        # Ragged path only; aligned production shapes skip the HBM round-trip.
        x2 = jnp.pad(x2, ((0, pad_m), (0, pad_h)))
    if x2.dtype != compute_dtype:
        x2 = x2.astype(compute_dtype)

    grid = (Mp // bm, Dp // bd)
    n_row_tiles = grid[0]

    w_itemsize = jnp.dtype(compute_dtype).itemsize
    out_itemsize = jnp.dtype(x.dtype).itemsize
    cost = pl.CostEstimate(
        flops=int(6 * Mp * Hp * Dp),
        transcendentals=int(Mp * Dp),
        bytes_accessed=int(
            x2.size * x2.dtype.itemsize                      # x streamed once
            + n_row_tiles * w_itemsize * (3 * Hp * Dp)       # wu + wd per row tile
            + Mp * Hp * out_itemsize                         # output write
            + n_row_tiles * 4 * (2 * Dp + Hp)                # f32 biases
        ),
    )

    # Optional 3-deep buffering for the per-j-step weight DMAs (use on v6e if
    # DMA is still within ~20% of compute after raising bm; skip on v7x).
    wspec_kw = {}
    if weight_buffers > 2:
        wspec_kw["pipeline_mode"] = pl.Buffered(weight_buffers)
    wu_spec = pl.BlockSpec((Hp, 2 * bd), lambda i, j: (0, j), **wspec_kw)
    wd_spec = pl.BlockSpec((bd, Hp), lambda i, j: (j, 0), **wspec_kw)

    # TODO(synk): add an H (output-width) grid axis so VMEM stops scaling with
    # model width (needed once Hp exceeds ~8K on v7x / ~12K on v5e/v6e).
    out = pl.pallas_call(
        functools.partial(glu_mlp_kernel, block_d=bd),
        out_shape=jax.ShapeDtypeStruct((Mp, Hp), x.dtype),
        grid_spec=pltpu.PrefetchScalarGridSpec(
            num_scalar_prefetch=0,
            grid=grid,
            in_specs=[
                pl.BlockSpec((bm, Hp), lambda i, j: (i, 0)),      # x row tile
                wu_spec,                                          # fused W_a|W_b tile
                pl.BlockSpec((1, 2 * bd), lambda i, j: (0, j)),   # fused up bias tile
                wd_spec,                                          # W_down tile
                pl.BlockSpec((1, Hp), lambda i, j: (0, 0)),       # down bias
            ],
            out_specs=pl.BlockSpec((bm, Hp), lambda i, j: (i, 0)),
            scratch_shapes=[pltpu.VMEM((bm, Hp), jnp.float32)],
        ),
        compiler_params=pltpu.CompilerParams(
            dimension_semantics=("parallel", "arbitrary"),
            vmem_limit_bytes=vmem_limit_bytes),
        cost_estimate=cost,
    )(x2, w_up_fused, b_up_fused, w_down_t, b_down)

    if pad_m or pad_h:
        out = out[:M, :H]
    return out.reshape(orig_shape)


def _reference(x, w_up, b_up, w_down, b_down):
    u = x @ w_up.T + b_up
    D = w_down.shape[-1]
    a, b = u[..., :D], u[..., D:]
    g = a * (b * jax.nn.sigmoid(b))
    return g @ w_down.T + b_down


if __name__ == "__main__":
    # Small, module-consistent shapes: batch=2, seq=8, hidden=32.
    batch, seq, hidden = 2, 8, 32
    down_size = int(4 / 3 * hidden)          # 42
    up_size = 2 * down_size                  # 84

    key = jax.random.PRNGKey(0)
    kx, ku, kbu, kd, kbd = jax.random.split(key, 5)

    x = jax.random.normal(kx, (batch, seq, hidden), dtype=jnp.float32)
    # Deterministic synthetic parameters (nn.Linear shapes: [out, in] / [out]).
    w_up = jax.random.normal(ku, (up_size, hidden), dtype=jnp.float32) * 0.05
    b_up = jax.random.normal(kbu, (up_size,), dtype=jnp.float32) * 0.01
    w_down = jax.random.normal(kd, (hidden, down_size), dtype=jnp.float32) * 0.05
    b_down = jax.random.normal(kbd, (hidden,), dtype=jnp.float32) * 0.01

    ref = _reference(x, w_up, b_up, w_down, b_down)

    # f32 path: exact-parity check against the PyTorch-equivalent reference.
    p32 = prepare_glu_params(w_up, b_up, w_down, b_down)
    out32 = glu_mlp(x, p32["w_up_fused"], p32["b_up_fused"],
                    p32["w_down_t"], p32["b_down"], block_d=p32["block_d"])
    out32 = jax.block_until_ready(out32)
    assert out32.shape == (batch, seq, hidden)
    assert jnp.allclose(out32, ref, atol=1e-5, rtol=1e-5), "f32 mismatch"

    # bf16 weight/activation streaming path (production dtype; f32 accumulate).
    pbf = prepare_glu_params(w_up, b_up, w_down, b_down,
                             param_dtype=jnp.bfloat16)
    outbf = glu_mlp(x, pbf["w_up_fused"], pbf["b_up_fused"],
                    pbf["w_down_t"], pbf["b_down"], block_d=pbf["block_d"])
    outbf = jax.block_until_ready(outbf)
    assert outbf.shape == (batch, seq, hidden)
    assert jnp.allclose(outbf.astype(jnp.float32), ref,
                        atol=3e-2, rtol=3e-2), "bf16 mismatch"

    print("KERNEL_OK")
</pallas_src>

<mosaic_0001>
module attributes {stable_mosaic.version = 11 : i64} {
  func.func @glu_mlp_kernel(%arg0: i32, %arg1: i32, %arg2: memref<16x128xf32, #tpu.memory_space<vmem>>, %arg3: memref<128x256xf32, #tpu.memory_space<vmem>>, %arg4: memref<1x256xf32, #tpu.memory_space<vmem>>, %arg5: memref<128x128xf32, #tpu.memory_space<vmem>>, %arg6: memref<1x128xf32, #tpu.memory_space<vmem>>, %arg7: memref<16x128xf32, #tpu.memory_space<vmem>>, %arg8: memref<16x128xf32, #tpu.memory_space<vmem>>) attributes {dimension_semantics = [#tpu.dimension_semantics<parallel>, #tpu.dimension_semantics<arbitrary>], iteration_bounds = array<i64: 1, 1>, scalar_prefetch = 0 : i64, scratch_operands = 1 : i64, tpu.core_type = #tpu.core_type<tc>, window_params = [{transform_indices = @transform_0, window_bounds = array<i64: 16, 128>}, {transform_indices = @transform_1, window_bounds = array<i64: 128, 256>}, {transform_indices = @transform_2, window_bounds = array<i64: 1, 256>}, {transform_indices = @transform_3, window_bounds = array<i64: 128, 128>}, {pipeline_mode = #tpu.pipeline_mode<synchronous>, transform_indices = @transform_4, window_bounds = array<i64: 1, 128>}, {transform_indices = @transform_5, window_bounds = array<i64: 16, 128>}]} {
    %c0_i32 = arith.constant 0 : i32
    %0 = arith.cmpi eq, %arg1, %c0_i32 : i32
    %1 = arith.extui %0 : i1 to i32
    %c0_i32_0 = arith.constant 0 : i32
    %2 = arith.cmpi ne, %1, %c0_i32_0 : i32
    scf.if %2 {
      %c0_16 = arith.constant 0 : index
      %c0_17 = arith.constant 0 : index
      %26 = vector.load %arg6[%c0_16, %c0_17] : memref<1x128xf32, #tpu.memory_space<vmem>>, vector<1x128xf32>
      %27 = vector.shape_cast %26 : vector<1x128xf32> to vector<1x128xf32>
      %28 = vector.broadcast %27 : vector<1x128xf32> to vector<16x128xf32>
      %c0_18 = arith.constant 0 : index
      %c0_19 = arith.constant 0 : index
      %29 = vector.load %arg8[%c0_18, %c0_19] : memref<16x128xf32, #tpu.memory_space<vmem>>, vector<16x128xf32>
      tpu.vector_store %arg8[%c0_18, %c0_19], %28 {strides = array<i32>} : memref<16x128xf32, #tpu.memory_space<vmem>>, vector<16x128xf32>,
    } else {
    }
    %c0 = arith.constant 0 : index
    %c0_1 = arith.constant 0 : index
    %3 = vector.load %arg2[%c0, %c0_1] : memref<16x128xf32, #tpu.memory_space<vmem>>, vector<16x128xf32>
    %c0_2 = arith.constant 0 : index
    %c0_3 = arith.constant 0 : index
    %4 = vector.load %arg3[%c0_2, %c0_3] : memref<128x256xf32, #tpu.memory_space<vmem>>, vector<128x256xf32>
    %cst = arith.constant dense<0.000000e+00> : vector<16x256xf32>
    %5 = tpu.matmul %3, %4, %cst {dimension_numbers = #tpu.dot_dimension_numbers<[1], [0], [0], [1], [0, 0, 1, 1], [], []>} : vector<16x128xf32>, vector<128x256xf32>, vector<16x256xf32> -> vector<16x256xf32>
    %c0_4 = arith.constant 0 : index
    %c0_5 = arith.constant 0 : index
    %6 = vector.load %arg4[%c0_4, %c0_5] : memref<1x256xf32, #tpu.memory_space<vmem>>, vector<1x256xf32>
    %7 = vector.broadcast %6 : vector<1x256xf32> to vector<16x256xf32>
    %8 = arith.addf %5, %7 : vector<16x256xf32>
    %9 = vector.extract_strided_slice %8 {offsets = [0, 0], sizes = [16, 128], strides = [1, 1]} : vector<16x256xf32> to vector<16x128xf32>
    %10 = vector.extract_strided_slice %8 {offsets = [0, 128], sizes = [16, 128], strides = [1, 1]} : vector<16x256xf32> to vector<16x128xf32>
    %11 = arith.negf %10 : vector<16x128xf32>
    %12 = math.exp %11 : vector<16x128xf32>
    %cst_6 = arith.constant 1.000000e+00 : f32
    %13 = vector.broadcast %cst_6 : f32 to vector<16x128xf32>
    %14 = arith.addf %13, %12 : vector<16x128xf32>
    %15 = arith.divf %13, %14 : vector<16x128xf32>
    %16 = arith.mulf %10, %15 : vector<16x128xf32>
    %17 = arith.mulf %9, %16 : vector<16x128xf32>
    %c0_7 = arith.constant 0 : index
    %c0_8 = arith.constant 0 : index
    %18 = vector.load %arg8[%c0_7, %c0_8] : memref<16x128xf32, #tpu.memory_space<vmem>>, vector<16x128xf32>
    %c0_9 = arith.constant 0 : index
    %c0_10 = arith.constant 0 : index
    %19 = vector.load %arg5[%c0_9, %c0_10] : memref<128x128xf32, #tpu.memory_space<vmem>>, vector<128x128xf32>
    %cst_11 = arith.constant dense<0.000000e+00> : vector<16x128xf32>
    %20 = tpu.matmul %17, %19, %cst_11 {dimension_numbers = #tpu.dot_dimension_numbers<[1], [0], [0], [1], [0, 0, 1, 1], [], []>} : vector<16x128xf32>, vector<128x128xf32>, vector<16x128xf32> -> vector<16x128xf32>
    %21 = arith.addf %18, %20 : vector<16x128xf32>
    %c0_12 = arith.constant 0 : index
    %c0_13 = arith.constant 0 : index
    %22 = vector.load %arg8[%c0_12, %c0_13] : memref<16x128xf32, #tpu.memory_space<vmem>>, vector<16x128xf32>
    tpu.vector_store %arg8[%c0_12, %c0_13], %21 {strides = array<i32>} : memref<16x128xf32, #tpu.memory_space<vmem>>, vector<16x128xf32>,
    %c0_i32_14 = arith.constant 0 : i32
    %23 = arith.cmpi eq, %arg1, %c0_i32_14 : i32
    %24 = arith.extui %23 : i1 to i32
    %c0_i32_15 = arith.constant 0 : i32
    %25 = arith.cmpi ne, %24, %c0_i32_15 : i32
    scf.if %25 {
      %c0_16 = arith.constant 0 : index
      %c0_17 = arith.constant 0 : index
      %26 = vector.load %arg8[%c0_16, %c0_17] : memref<16x128xf32, #tpu.memory_space<vmem>>, vector<16x128xf32>
      %c0_18 = arith.constant 0 : index
      %c0_19 = arith.constant 0 : index
      %27 = vector.load %arg7[%c0_18, %c0_19] : memref<16x128xf32, #tpu.memory_space<vmem>>, vector<16x128xf32>
      tpu.vector_store %arg7[%c0_18, %c0_19], %26 {strides = array<i32>} : memref<16x128xf32, #tpu.memory_space<vmem>>, vector<16x128xf32>,
    } else {
    }
    return
  }
  func.func @transform_0(%arg0: i32, %arg1: i32) -> (i32, i32) {
    %c0_i32 = arith.constant 0 : i32
    %c0_i32_0 = arith.constant 0 : i32
    return %arg0, %c0_i32 : i32, i32
  }
  func.func @transform_1(%arg0: i32, %arg1: i32) -> (i32, i32) {
    %c0_i32 = arith.constant 0 : i32
    %c0_i32_0 = arith.constant 0 : i32
    return %c0_i32, %arg1 : i32, i32
  }
  func.func @transform_2(%arg0: i32, %arg1: i32) -> (i32, i32) {
    %c0_i32 = arith.constant 0 : i32
    %c0_i32_0 = arith.constant 0 : i32
    return %c0_i32, %arg1 : i32, i32
  }
  func.func @transform_3(%arg0: i32, %arg1: i32) -> (i32, i32) {
    %c0_i32 = arith.constant 0 : i32
    %c0_i32_0 = arith.constant 0 : i32
    return %arg1, %c0_i32 : i32, i32
  }
  func.func @transform_4(%arg0: i32, %arg1: i32) -> (i32, i32) {
    %c0_i32 = arith.constant 0 : i32
    %c0_i32_0 = arith.constant 0 : i32
    %c0_i32_1 = arith.constant 0 : i32
    return %c0_i32, %c0_i32_0 : i32, i32
  }
  func.func @transform_5(%arg0: i32, %arg1: i32) -> (i32, i32) {
    %c0_i32 = arith.constant 0 : i32
    %c0_i32_0 = arith.constant 0 : i32
    return %arg0, %c0_i32 : i32, i32
  }
}

</mosaic_0001>

<bundles_post_ra>
// kernel: glu_mlp.1
= control target key start
LH: loop header
LB: loop body
LE: loop exit
PB: predicated region body
PF: predicated region fallthrough
CT: control target
= control target key end

     0   :  { %10 = vsyncpa [#allocation4], 0  ;;  %s574_s0 = inlined_call_operand.vmem [shape: f32[16,128], index: 0, kind: input, shape index: {}]   ;;  %s575_s1 = inlined_call_operand.hbm [shape: f32[128,256], index: 1, kind: input, shape index: {}]   ;;  %s576_s2 = inlined_call_operand.vmem [shape: f32[1,256], index: 2, kind: input, shape index: {}]   ;;  %s577_s3 = inlined_call_operand.hbm [shape: f32[128,128], index: 3, kind: input, shape index: {}]   ;;  %s578_s4 = inlined_call_operand.vmem [shape: f32[1,128], index: 4, kind: input, shape index: {}]   ;;  %s579_s5 = inlined_call_operand.vmem [shape: f32[16,128], index: 5, kind: output, shape index: {}]  }
   0x1   :  { %11 = vsyncpa [#allocation6], 0  ;;  %s493_s18 = smov [#allocation3]   ;;  %s445_s22 = scalar_lea.hbm %s575_s1, 4096 }
   0x2   :  { %s19_s19 = sshll.u32 %s493_s18, 4  ;;  %p446_p0 = scmp.ne.s32.totalorder %s575_s1, %s445_s22  ;;  %s20_s19 = int_to_ptr.vmem [resolvable:$true] %s19_s19 }
   0x3   :  { %p449_p1 = scmp.lt.u32.totalorder %s445_s22, %s575_s1 }
   0x5   :  { %p451_p2 = pnand %p449_p1, %p446_p0 }
   0x7   :  { %454 = shalt.err (!%p451_p2)
}
   0x8   :  { %s455_s27 = scalar_lea.vmem %s20_s19, 4096  ;;  %p460_p4 = scmp.lt.s32.totalorder %s20_s19, %s20_s19 }
   0x9   :  { %p456_p3 = scmp.ne.s32.totalorder %s20_s19, %s455_s27  ;;  %p461_p5 = scmp.lt.s32.totalorder %s455_s27, %s455_s27 }
   0xb   :  { %p462_p6 = por %p461_p5, %p460_p4 }
   0xd   :  { %p463_p7 = pnand %p462_p6, %p456_p3 }
   0xf   :  { %466 = shalt.err (!%p463_p7)
}
  0x10   :  { %s494_s28 = smov 256   ;;  %s495_s29 = smov 16  }
  0x11   :  { %25 = dma.hbm_to_vmem [thread:$0]  %s575_s1, 4096, %s20_s19, [#allocation4], %s494_s28, %s494_s28, %s495_s29  }
  0x12   :  { %s496_s7 = smov [#allocation5]   ;;  %s467_s11 = scalar_lea.hbm %s577_s3, 2048 }
  0x13   :  { %s33_s8 = sshll.u32 %s496_s7, 4  ;;  %p468_p8 = scmp.ne.s32.totalorder %s577_s3, %s467_s11  ;;  %s34_s8 = int_to_ptr.vmem [resolvable:$true] %s33_s8 }
  0x14   :  { %p471_p9 = scmp.lt.u32.totalorder %s467_s11, %s577_s3 }
  0x16   :  { %p473_p10 = pnand %p471_p9, %p468_p8 }
  0x18   :  { %476 = shalt.err (!%p473_p10)
}
  0x19   :  { %s477_s16 = scalar_lea.vmem %s34_s8, 2048  ;;  %p482_p12 = scmp.lt.s32.totalorder %s34_s8, %s34_s8 }
  0x1a   :  { %p478_p11 = scmp.ne.s32.totalorder %s34_s8, %s477_s16  ;;  %p483_p13 = scmp.lt.s32.totalorder %s477_s16, %s477_s16 }
  0x1c   :  { %p484_p0 = por %p483_p13, %p482_p12 }
  0x1e   :  { %p485_p1 = pnand %p484_p0, %p478_p11 }
  0x20   :  { %488 = shalt.err (!%p485_p1)
}
  0x21   :  { %s497_s1 = smov 128   ;;  %s498_s17 = smov 8  }
  0x22   :  { %39 = dma.hbm_to_vmem [thread:$0]  %s577_s3, 2048, %s34_s8, [#allocation6], %s497_s1, %s497_s1, %s498_s17  }
  0x23   :  { %489 = dma.done.wait [#allocation4], 4096  }
  0x24   :  { %490 = vsyncadd [#allocation4], 4294963200 }
  0x25   :  { %491 = dma.done.wait [#allocation6], 2048  }
  0x26   :  { %492 = vsyncadd [#allocation6], 4294965248  ;;  %v499_v0 = vmov 0.0   ;;  %v64_v1 = vld [vmem:[#allocation3 + $0x8] sm:$0xff]  ;;  %v66_v2 = vld [vmem:[#allocation3 + $0x18] sm:$0xff] }
  0x27   :  { %171 = vmatprep.mubr.f32.mxu0 %v499_v0  ;;  %v63_v3 = vld [vmem:[#allocation3] sm:$0xff]  ;;  %v366_v4 = vpack.c.bf16 %v66_v2, %v64_v1  ;;  %v65_v5 = vld [vmem:[#allocation3 + $0x10] sm:$0xff]  ;;  %v68_v6 = vld [vmem:[#allocation3 + $0x28] sm:$0xff] }
  0x28   :  { %v70_v7 = vld [vmem:[#allocation3 + $0x38] sm:$0xff]  ;;  %v368_v8 = vpack.c.bf16 %v65_v5, %v63_v3  ;;  %v67_v10 = vld [vmem:[#allocation3 + $0x20] sm:$0xff]  ;;  %v69_v11 = vld [vmem:[#allocation3 + $0x30] sm:$0xff] }
  0x29   :  { %v370_v9 = vpack.c.bf16 %v70_v7, %v68_v6  ;;  %v72_v12 = vld [vmem:[#allocation3 + $0x48] sm:$0xff]  ;;  %367 = vmatprep.subr.bf16.mxu0 %v366_v4  ;;  %v74_v13 = vld [vmem:[#allocation3 + $0x58] sm:$0xff]  ;;  %v372_v14 = vpack.c.bf16 %v69_v11, %v67_v10  ;;  %v71_v16 = vld [vmem:[#allocation3 + $0x40] sm:$0xff]  ;;  %v97_v11 = vlaneseq }
  0x2a   :  { %369 = vmatpush1.bf16.msra.mxu0 %v368_v8  ;;  %v374_v15 = vpack.c.bf16 %v74_v13, %v72_v12  ;;  %v73_v17 = vld [vmem:[#allocation3 + $0x50] sm:$0xff]  ;;  %v76_v18 = vld [vmem:[#allocation3 + $0x68] sm:$0xff]  ;;  %v78_v19 = vld [vmem:[#allocation3 + $0x78] sm:$0xff] }
  0x2b   :  { %371 = vmatprep.subr.bf16.mxu0 %v370_v9  ;;  %v376_v20 = vpack.c.bf16 %v73_v17, %v71_v16  ;;  %v378_v21 = vpack.c.bf16 %v78_v19, %v76_v18  ;;  %v75_v22 = vld [vmem:[#allocation3 + $0x60] sm:$0xff]  ;;  %v77_v23 = vld [vmem:[#allocation3 + $0x70] sm:$0xff]  ;;  %v80_v24 = vld [vmem:[#allocation3 + $0x88] sm:$0xff]  ;;  %v98_v12 = vshrl.u32 %v97_v11, 7 }
  0x2c   :  { %v82_v25 = vld [vmem:[#allocation3 + $0x98] sm:$0xff]  ;;  %v380_v26 = vpack.c.bf16 %v77_v23, %v75_v22  ;;  %v79_v28 = vld [vmem:[#allocation3 + $0x80] sm:$0xff]  ;;  %v81_v29 = vld [vmem:[#allocation3 + $0x90] sm:$0xff] }
  0x2d   :  { %v382_v27 = vpack.c.bf16 %v82_v25, %v80_v24  ;;  %v84_v30 = vld [vmem:[#allocation3 + $0xa8] sm:$0xff]  ;;  %v86_v31 = vld [vmem:[#allocation3 + $0xb8] sm:$0xff]  ;;  %v384_v32 = vpack.c.bf16 %v81_v29, %v79_v28  ;;  %v83_v34 = vld [vmem:[#allocation3 + $0xa0] sm:$0xff]  ;;  %v103_v13 = vsub.s32 1, %v98_v12  ;;  %v99_v28 = vsub.s32 0, %v98_v12 }
  0x2e   :  { %373 = vmatpush1.bf16.msra.mxu0 %v372_v14  ;;  %v386_v33 = vpack.c.bf16 %v86_v31, %v84_v30  ;;  %v85_v35 = vld [vmem:[#allocation3 + $0xb0] sm:$0xff]  ;;  %v88_v36 = vld [vmem:[#allocation3 + $0xc8] sm:$0xff]  ;;  %v90_v37 = vld [vmem:[#allocation3 + $0xd8] sm:$0xff] }
  0x2f   :  { %375 = vmatprep.subr.bf16.mxu0 %v374_v15  ;;  %v388_v38 = vpack.c.bf16 %v85_v35, %v83_v34  ;;  %v390_v39 = vpack.c.bf16 %v90_v37, %v88_v36  ;;  %v87_v40 = vld [vmem:[#allocation3 + $0xc0] sm:$0xff]  ;;  %v89_v41 = vld [vmem:[#allocation3 + $0xd0] sm:$0xff]  ;;  %v92_v42 = vld [vmem:[#allocation3 + $0xe8] sm:$0xff] }
  0x30   :  { %v94_v43 = vld [vmem:[#allocation3 + $0xf8] sm:$0xff]  ;;  %v392_v44 = vpack.c.bf16 %v89_v41, %v87_v40  ;;  %v91_v46 = vld [vmem:[#allocation3 + $0xe0] sm:$0xff]  ;;  %v93_v47 = vld [vmem:[#allocation3 + $0xf0] sm:$0xff] }
  0x31   :  { %v394_v45 = vpack.c.bf16 %v94_v43, %v92_v42  ;;  %v396_v48 = vpack.c.bf16 %v93_v47, %v91_v46  ;;  %v61_v49 = vld [vmem:[%s574_s0] sm:$0xff]  ;;  %v62_v50 = vld [vmem:[%s574_s0 + $0x8] sm:$0xff]  ;;  %v204_v54 = vld [vmem:[#allocation5 + $0x10] sm:$0xff] }
  0x32   :  { %377 = vmatpush1.bf16.msra.mxu0 %v376_v20  ;;  %v202_v51 = vld [vmem:[#allocation5] sm:$0xff]  ;;  %v203_v52 = vld [vmem:[#allocation5 + $0x8] sm:$0xff]  ;;  %v205_v55 = vld [vmem:[#allocation5 + $0x18] sm:$0xff] }
  0x33   :  { %379 = vmatprep.subr.bf16.mxu0 %v378_v21  ;;  %v398_v53 = vpack.c.bf16 %v203_v52, %v202_v51  ;;  %v402_v56 = vpack.c.bf16 %v205_v55, %v204_v54  ;;  %v206_v57 = vld [vmem:[#allocation5 + $0x20] sm:$0xff]  ;;  %v207_v58 = vld [vmem:[#allocation5 + $0x28] sm:$0xff]  ;;  %v208_v60 = vld [vmem:[#allocation5 + $0x30] sm:$0xff] }
  0x34   :  { %v406_v59 = vpack.c.bf16 %v207_v58, %v206_v57  ;;  %v209_v61 = vld [vmem:[#allocation5 + $0x38] sm:$0xff]  ;;  %v210_v63 = vld [vmem:[#allocation5 + $0x40] sm:$0xff]  ;;  %v212_v2 = vld [vmem:[#allocation5 + $0x50] sm:$0xff] }
  0x35   :  { %399 = vmatprep.subr.bf16.mxu1 %v398_v53  ;;  %v410_v62 = vpack.c.bf16 %v209_v61, %v208_v60  ;;  %v213_v3 = vld [vmem:[#allocation5 + $0x58] sm:$0xff]  ;;  %v214_v5 = vld [vmem:[#allocation5 + $0x60] sm:$0xff]  ;;  %v215_v6 = vld [vmem:[#allocation5 + $0x68] sm:$0xff] }
  0x36   :  { %381 = vmatpush1.bf16.msra.mxu0 %v380_v26  ;;  %401 = vmatpush3.bf16.msra.mxu1 %v398_v53  ;;  %v418_v4 = vpack.c.bf16 %v213_v3, %v212_v2  ;;  %v422_v7 = vpack.c.bf16 %v215_v6, %v214_v5  ;;  %v216_v8 = vld [vmem:[#allocation5 + $0x70] sm:$0xff]  ;;  %v217_v9 = vld [vmem:[#allocation5 + $0x78] sm:$0xff]  ;;  %v95_v14 = vld [vmem:[%s576_s2] sm:$0x3] }
  0x37   :  { %383 = vmatprep.subr.bf16.mxu0 %v382_v27  ;;  %403 = vmatprep.subr.bf16.mxu1 %v402_v56  ;;  %v426_v10 = vpack.c.bf16 %v217_v9, %v216_v8  ;;  %v104_v15 = vrot.slane %v95_v14, %v103_v13  ;;  %v100_v29 = vrot.slane %v95_v14, %v99_v28 }
  0x3a   :  { %385 = vmatpush1.bf16.msra.mxu0 %v384_v32  ;;  %405 = vmatpush3.bf16.msra.mxu1 %v402_v56 }
  0x3b   :  { %387 = vmatprep.subr.bf16.mxu0 %v386_v33  ;;  %407 = vmatprep.subr.bf16.mxu1 %v406_v59 }
  0x3e   :  { %389 = vmatpush1.bf16.msra.mxu0 %v388_v38  ;;  %409 = vmatpush3.bf16.msra.mxu1 %v406_v59  ;;  %v310_v38 = vld [vmem:[%s578_s4] ss:$0 sm:$0xff] }
  0x3f   :  { %391 = vmatprep.subr.bf16.mxu0 %v390_v39  ;;  %411 = vmatprep.subr.bf16.mxu1 %v410_v62 }
  0x42   :  { %393 = vmatpush1.bf16.msra.mxu0 %v392_v44  ;;  %413 = vmatpush3.bf16.msra.mxu1 %v410_v62 }
  0x43   :  { %395 = vmatprep.subr.bf16.mxu0 %v394_v45 }
  0x46   :  { %397 = vmatpush1.bf16.msra.mxu0 %v396_v48 }
  0x49   :  { %172 = vmatmul.mubr.f32.vlgmr.msra.gmra.mrb[0].mxu0 %v61_v49 }
  0x4a   :  { %177 = vmatprep.mubr.f32.mxu0 %v499_v0  ;;  %v211_v0 = vld [vmem:[#allocation5 + $0x48] sm:$0xff] }
  0x4b   :  { %v414_v1 = vpack.c.bf16 %v211_v0, %v210_v63 }
  0x4d   :  { %178 = vmatmul.mubr.f32.gmra.mrb[2].mxu0 %v62_v50  ;;  %415 = vmatprep.subr.bf16.mxu1 %v414_v1 }
  0x4e   :  { %417 = vmatpush3.bf16.msra.mxu1 %v414_v1 }
  0x4f   :  { %419 = vmatprep.subr.bf16.mxu1 %v418_v4 }
  0x52   :  { %421 = vmatpush3.bf16.msra.mxu1 %v418_v4 }
  0x53   :  { %423 = vmatprep.subr.bf16.mxu1 %v422_v7 }
  0x56   :  { %425 = vmatpush3.bf16.msra.mxu1 %v422_v7 }
  0x57   :  { %427 = vmatprep.subr.bf16.mxu1 %v426_v10 }
  0x5a   :  { %429 = vmatpush3.bf16.msra.mxu1 %v426_v10 }
 0x11c   :  { %v173_v16 = vpop.f32.mrb[0].mxu0 }
 0x11d   :  { %v175_v17 = vpop.f32.mrb[1].mxu0  ;;  %v174_v31 = vadd.f32 %v173_v16, %v100_v29 }
 0x11e   :  { %v176_v18 = vadd.f32 %v175_v17, %v104_v15 }
 0x120   :  { %v311_v19 = vmul.f32 -1.442695, %v176_v18  ;;  %v179_v20 = vpop.f32.mrb[2].mxu0 }
 0x121   :  { %v181_v21 = vpop.f32.mrb[3].mxu0  ;;  %v180_v35 = vadd.f32 %v179_v20, %v100_v29 }
 0x122   :  { %437 = vpow2.f32 %v311_v19  ;;  %v182_v22 = vadd.f32 %v181_v21, %v104_v15 }
 0x124   :  { %v312_v23 = vmul.f32 -1.442695, %v182_v22 }
 0x126   :  { %439 = vpow2.f32 %v312_v23 }
 0x12c   :  { %v438_v24 = vpop.eup %437 }
 0x12d   :  { %v190_v25 = vadd.f32 1.0, %v438_v24 }
 0x12f   :  { %441 = vrcp.f32 %v190_v25 }
 0x130   :  { %v440_v26 = vpop.eup %439 }
 0x131   :  { %v191_v27 = vadd.f32 1.0, %v440_v26 }
 0x133   :  { %443 = vrcp.f32 %v191_v27 }
 0x139   :  { %v442_v30 = vpop.eup %441 }
 0x13a   :  { %v196_v32 = vmul.f32 %v442_v30, %v176_v18 }
 0x13c   :  { %v198_v33 = vmul.f32 %v196_v32, %v174_v31 }
 0x13d   :  { %v444_v34 = vpop.eup %443 }
 0x13e   :  { %v197_v36 = vmul.f32 %v444_v34, %v182_v22  ;;  %363 = vmatprep.mubr.f32.mxu1 %v198_v33 }
 0x140   :  { %v199_v37 = vmul.f32 %v197_v36, %v180_v35 }
 0x142   :  { %364 = vmatmul.mubr.f32.vlgmr.msra.gmra.mrb[0].mxu1 %v199_v37 }
 0x215   :  { %v365_v39 = vpop.f32.mrb[0].mxu1 }
 0x216   :  { %v294_v40 = vadd.f32 %v365_v39, %v310_v38  ;;  %v284_v41 = vpop.f32.mrb[1].mxu1 }
 0x217   :  { %v293_v42 = vadd.f32 %v310_v38, %v284_v41 }
 0x218   :  { %303 = vst [vmem:[%s579_s5 + $0x8] sm:$0xff] %v294_v40 }
 0x219   :  { %302 = vst [vmem:[%s579_s5] sm:$0xff] %v293_v42 }
 0x21a   :  { %308 = vsyncpa [#allocation4], 1 }
 0x21b   :  { %309 = vsyncpa [#allocation6], 1 }

</bundles_post_ra>
